<compile_context>
chip_gen: v6e
topology: v6e:2x2x1
jax: 0.10.0
libtpu: 0.0.40
codegen_flags: <defaults>
</compile_context>

<pallas_src>
import functools

import jax
import jax.numpy as jnp
from jax.experimental import pallas as pl
from jax.experimental.pallas import tpu as pltpu


def _mse_partial_kernel(pred_ref, gt_ref, out_ref, *, normalize):
    p = pred_ref[...].astype(jnp.float32)
    g = gt_ref[...].astype(jnp.float32)

    if normalize:
        # torch.nn.functional.normalize(x, p=2, dim=-1): x / max(||x||_2, eps)
        # Implemented as x * rsqrt(max(sum_sq, eps^2))  (EUP, no sqrt/divide).
        eps = 1e-12
        p_inv = jax.lax.rsqrt(
            jnp.maximum(jnp.sum(p * p, axis=-1, keepdims=True), eps * eps))
        g_inv = jax.lax.rsqrt(
            jnp.maximum(jnp.sum(g * g, axis=-1, keepdims=True), eps * eps))
        p = p * p_inv
        g = g * g_inv

    d = p - g
    # Per-block partial sums reduced over the batch-tile (sublane) axis only;
    # the tiny cross-block and lane reductions are done in the wrapper.
    out_ref[...] = jnp.sum(d * d, axis=0, keepdims=True)[None]


def _round_up(x, m):
    return ((x + m - 1) // m) * m


def mse_pallas(pred, gt, norm_dim=None, *, block_batch=None,
               target_block_bytes=4 << 20):
    """Pallas equivalent of MSE(norm_dim).forward(pred, gt).

    Args:
        pred, gt: arrays of shape [batch, d_model].
        norm_dim: None, or the feature dim (1 / -1) to L2-normalize along.
    Returns:
        scalar float32 MSE.
    """
    assert pred.shape == gt.shape and pred.ndim == 2
    B, D = pred.shape

    if norm_dim is None:
        normalize = False
    elif norm_dim in (1, -1):
        normalize = True
    else:
        # TODO(synk): norm_dim=0 (normalize across the batch axis) would need a
        # single-block or two-pass kernel; not implemented here.
        raise NotImplementedError("norm_dim must be None, 1, or -1")

    itemsize = jnp.dtype(pred.dtype).itemsize
    # Sublane packing multiple: 8 rows for f32, 16 for bf16, 32 for 1-byte.
    mult = max(8, 32 // itemsize)

    if block_batch is None:
        # Biggest tile <= target_block_bytes per input buffer (2 inputs x
        # 2 pipeline buffers => ~4x this in VMEM), rounded to the packing
        # multiple, and no bigger than the (padded) batch itself.
        rows = max(mult, (target_block_bytes // (itemsize * D)) // mult * mult)
        block_batch = min(rows, _round_up(B, mult))
    else:
        block_batch = max(mult, _round_up(block_batch, mult))

    # Zero-pad the batch to a multiple of the tile.  Padded rows have
    # pred == gt == 0, so they contribute 0 to the squared-error sum in both
    # the plain and the L2-normalized paths.
    B_pad = _round_up(B, block_batch)
    if B_pad != B:
        pad = ((0, B_pad - B), (0, 0))
        pred = jnp.pad(pred, pad)
        gt = jnp.pad(gt, pad)
    num_blocks = B_pad // block_batch

    block_bytes = block_batch * D * itemsize
    # 2 inputs x 2 pipeline buffers + output/partials + headroom; capped at
    # 48 MiB so it is safe on v7x's 64 MiB VMEM as well as v5e/v6e.
    vmem_limit = int(min(48 << 20, max(32 << 20, 4 * block_bytes + (8 << 20))))

    kernel = functools.partial(_mse_partial_kernel, normalize=normalize)

    partials = pl.pallas_call(
        kernel,
        out_shape=jax.ShapeDtypeStruct((num_blocks, 1, D), jnp.float32),
        grid_spec=pltpu.PrefetchScalarGridSpec(
            num_scalar_prefetch=0,
            grid=(num_blocks,),
            in_specs=[
                pl.BlockSpec((block_batch, D), lambda i: (i, 0)),
                pl.BlockSpec((block_batch, D), lambda i: (i, 0)),
            ],
            out_specs=pl.BlockSpec((1, 1, D), lambda i: (i, 0, 0)),
        ),
        compiler_params=pltpu.CompilerParams(
            # Each grid step writes an independent partial-sum block, so the
            # grid axis is truly parallel (megacore sharding on v7x).
            dimension_semantics=("parallel",),
            vmem_limit_bytes=vmem_limit,
        ),
    )(pred, gt)

    # Tiny final reduction + mean scale in plain JAX (f32), dividing by the
    # ORIGINAL element count (padded rows contributed exactly 0).
    return jnp.sum(partials) * (1.0 / float(B * D))


def _mse_ref(pred, gt, norm_dim=None):
    p = pred.astype(jnp.float32)
    g = gt.astype(jnp.float32)
    if norm_dim is not None:
        eps = 1e-12
        p = p / jnp.maximum(jnp.linalg.norm(p, axis=norm_dim, keepdims=True), eps)
        g = g / jnp.maximum(jnp.linalg.norm(g, axis=norm_dim, keepdims=True), eps)
    return jnp.mean(jnp.square(p - g))


if __name__ == "__main__":
    key = jax.random.PRNGKey(0)
    k1, k2, k3, k4 = jax.random.split(key, 4)

    # Small shapes consistent with the module: [batch, d_model].
    batch, d_model = 16, 128
    pred = jax.random.normal(k1, (batch, d_model), dtype=jnp.float32)
    gt = jax.random.normal(k2, (batch, d_model), dtype=jnp.float32)

    # norm_dim=None case.
    out_plain = jax.block_until_ready(mse_pallas(pred, gt, norm_dim=None))
    ref_plain = _mse_ref(pred, gt, norm_dim=None)
    assert jnp.allclose(out_plain, ref_plain, rtol=1e-5, atol=1e-6), (
        out_plain, ref_plain)

    # norm_dim=-1 case (L2-normalize rows before MSE).
    out_norm = jax.block_until_ready(mse_pallas(pred, gt, norm_dim=-1))
    ref_norm = _mse_ref(pred, gt, norm_dim=-1)
    assert jnp.allclose(out_norm, ref_norm, rtol=1e-5, atol=1e-6), (
        out_norm, ref_norm)

    # Ragged batch (not a multiple of 8) exercises the zero-padding path.
    pred_r = jax.random.normal(k3, (10, 96), dtype=jnp.float32)
    gt_r = jax.random.normal(k4, (10, 96), dtype=jnp.float32)
    out_r = jax.block_until_ready(mse_pallas(pred_r, gt_r, norm_dim=-1))
    ref_r = _mse_ref(pred_r, gt_r, norm_dim=-1)
    assert jnp.allclose(out_r, ref_r, rtol=1e-5, atol=1e-6), (out_r, ref_r)

    print("KERNEL_OK")
</pallas_src>

<mosaic_0001>
module attributes {stable_mosaic.version = 11 : i64} {
  func.func @_mse_partial_kernel(%arg0: i32, %arg1: memref<16x128xf32, #tpu.memory_space<vmem>>, %arg2: memref<16x128xf32, #tpu.memory_space<vmem>>, %arg3: memref<1x1x128xf32, #tpu.memory_space<vmem>>) attributes {dimension_semantics = [#tpu.dimension_semantics<parallel>], iteration_bounds = array<i64: 1>, scalar_prefetch = 0 : i64, scratch_operands = 0 : i64, tpu.core_type = #tpu.core_type<tc>, window_params = [{transform_indices = @transform_0, window_bounds = array<i64: 16, 128>}, {transform_indices = @transform_1, window_bounds = array<i64: 16, 128>}, {transform_indices = @transform_2, window_bounds = array<i64: 1, 1, 128>}]} {
    %c0 = arith.constant 0 : index
    %c0_0 = arith.constant 0 : index
    %0 = vector.load %arg1[%c0, %c0_0] : memref<16x128xf32, #tpu.memory_space<vmem>>, vector<16x128xf32>
    %c0_1 = arith.constant 0 : index
    %c0_2 = arith.constant 0 : index
    %1 = vector.load %arg2[%c0_1, %c0_2] : memref<16x128xf32, #tpu.memory_space<vmem>>, vector<16x128xf32>
    %2 = arith.subf %0, %1 : vector<16x128xf32>
    %3 = arith.mulf %2, %2 : vector<16x128xf32>
    %cst = arith.constant dense<0.000000e+00> : vector<128xf32>
    %4 = vector.multi_reduction <add>, %3, %cst [0] : vector<16x128xf32> to vector<128xf32>
    %5 = vector.shape_cast %4 : vector<128xf32> to vector<1x128xf32>
    %6 = vector.shape_cast %5 : vector<1x128xf32> to vector<1x1x128xf32>
    %c0_3 = arith.constant 0 : index
    %c0_4 = arith.constant 0 : index
    %c0_5 = arith.constant 0 : index
    %7 = vector.load %arg3[%c0_3, %c0_4, %c0_5] : memref<1x1x128xf32, #tpu.memory_space<vmem>>, vector<1x1x128xf32>
    tpu.vector_store %arg3[%c0_3, %c0_4, %c0_5], %6 {strides = array<i32>} : memref<1x1x128xf32, #tpu.memory_space<vmem>>, vector<1x1x128xf32>,
    return
  }
  func.func @transform_0(%arg0: i32) -> (i32, i32) {
    %c0_i32 = arith.constant 0 : i32
    %c0_i32_0 = arith.constant 0 : i32
    return %arg0, %c0_i32 : i32, i32
  }
  func.func @transform_1(%arg0: i32) -> (i32, i32) {
    %c0_i32 = arith.constant 0 : i32
    %c0_i32_0 = arith.constant 0 : i32
    return %arg0, %c0_i32 : i32, i32
  }
  func.func @transform_2(%arg0: i32) -> (i32, i32, i32) {
    %c0_i32 = arith.constant 0 : i32
    %c0_i32_0 = arith.constant 0 : i32
    %c0_i32_1 = arith.constant 0 : i32
    return %arg0, %c0_i32, %c0_i32_0 : i32, i32, i32
  }
}

</mosaic_0001>

<bundles_post_ra>
// kernel: tpu_custom_call.1
= control target key start
LH: loop header
LB: loop body
LE: loop exit
PB: predicated region body
PF: predicated region fallthrough
CT: control target
= control target key end

     0   :  { %7 = vsyncpa [#allocation3], 0  ;;  %s172_s0 = inlined_call_operand.hbm [shape: f32[16,128], index: 0, kind: input, shape index: {}]   ;;  %s173_s1 = inlined_call_operand.hbm [shape: f32[16,128], index: 1, kind: input, shape index: {}]   ;;  %s174_s2 = inlined_call_operand.hbm [shape: f32[1,1,128], index: 2, kind: output, shape index: {}]  }
   0x1   :  { %8 = vsyncpa [#allocation6], 0 }
   0x2   :  { %9 = vsyncpa [#allocation4], 0  ;;  %s143_s9 = smov [#allocation2]  }
   0x3   :  { %s15_s10 = sshll.u32 %s143_s9, 4  ;;  %s16_s10 = int_to_ptr.vmem [resolvable:$true] %s15_s10 }
   0x4   :  { %s85_s11 = scalar_lea.vmem %s16_s10, 256  ;;  %p90_p1 = scmp.lt.s32.totalorder %s16_s10, %s16_s10 }
   0x5   :  { %p86_p0 = scmp.ne.s32.totalorder %s16_s10, %s85_s11  ;;  %p91_p2 = scmp.lt.s32.totalorder %s85_s11, %s85_s11 }
   0x7   :  { %p92_p3 = por %p91_p2, %p90_p1 }
   0x9   :  { %p93_p4 = pnand %p92_p3, %p86_p0 }
   0xb   :  { %96 = shalt.err (!%p93_p4)
}
   0xc   :  { %s144_s12 = smov 128   ;;  %s145_s13 = smov 8  }
   0xd   :  { %21 = dma.hbm_to_vmem [thread:$0]  %s172_s0, 256, %s16_s10, [#allocation3], %s144_s12, %s144_s12, %s145_s13  }
   0xe   :  { %s146_s16 = smov [#allocation5]  }
   0xf   :  { %s27_s17 = sshll.u32 %s146_s16, 4  ;;  %s28_s17 = int_to_ptr.vmem [resolvable:$true] %s27_s17 }
  0x10   :  { %s105_s18 = scalar_lea.vmem %s28_s17, 256  ;;  %p110_p6 = scmp.lt.s32.totalorder %s28_s17, %s28_s17 }
  0x11   :  { %p106_p5 = scmp.ne.s32.totalorder %s28_s17, %s105_s18  ;;  %p111_p7 = scmp.lt.s32.totalorder %s105_s18, %s105_s18 }
  0x13   :  { %p112_p8 = por %p111_p7, %p110_p6 }
  0x15   :  { %p113_p9 = pnand %p112_p8, %p106_p5 }
  0x17   :  { %116 = shalt.err (!%p113_p9)
}
  0x18   :  { %33 = dma.hbm_to_vmem [thread:$0]  %s173_s1, 256, %s28_s17, [#allocation6], %s144_s12, %s144_s12, %s145_s13  }
  0x19   :  { %137 = dma.done.wait [#allocation3], 256  }
  0x1a   :  { %138 = vsyncadd [#allocation3], 4294967040 }
  0x1b   :  { %139 = dma.done.wait [#allocation6], 256  }
  0x1c   :  { %140 = vsyncadd [#allocation6], 4294967040  ;;  %v40_v0 = vld [vmem:[#allocation2] sm:$0xff]  ;;  %v41_v1 = vld [vmem:[#allocation2 + $0x8] sm:$0xff]  ;;  %s147_s0 = smov [#allocation7]  }
  0x1d   :  { %v42_v2 = vld [vmem:[#allocation5] sm:$0xff]  ;;  %v43_v3 = vld [vmem:[#allocation5 + $0x8] sm:$0xff]  ;;  %s62_s21 = sshll.u32 %s147_s0, 4  ;;  %s63_s21 = int_to_ptr.vmem [resolvable:$true] %s62_s21 }
  0x1e   :  { %v44_v4 = vsub.f32 %v40_v0, %v42_v2  ;;  %v45_v5 = vsub.f32 %v41_v1, %v43_v3  ;;  %s117_s1 = scalar_lea.vmem %s63_s21, 16  ;;  %s121_s22 = scalar_lea.vmem %s63_s21, 32 }
  0x1f   :  { %p118_p10 = scmp.ne.s32.totalorder %s63_s21, %s117_s1  ;;  %p122_p11 = scmp.lt.s32.totalorder %s63_s21, %s63_s21 }
  0x20   :  { %v46_v6 = vmul.f32 %v44_v4, %v44_v4  ;;  %v47_v7 = vmul.f32 %v45_v5, %v45_v5  ;;  %p123_p12 = scmp.lt.s32.totalorder %s121_s22, %s117_s1 }
  0x22   :  { %v48_v8 = vadd.f32 %v47_v7, %v46_v6  ;;  %p124_p13 = por %p123_p12, %p122_p11 }
  0x24   :  { %v49_v9 = vrot.slane %v48_v8, 4  ;;  %p125_p0 = pnand %p124_p13, %p118_p10 }
  0x26   :  { %v50_v10 = vadd.f32 %v49_v9, %v48_v8 }
  0x28   :  { %v51_v11 = vrot.slane %v50_v10, 2 }
  0x2a   :  { %v52_v12 = vadd.f32 %v51_v11, %v50_v10 }
  0x2c   :  { %v53_v13 = vrot.slane %v52_v12, 1 }
  0x2e   :  { %v54_v14 = vadd.f32 %v53_v13, %v52_v12 }
  0x30   :  { %55 = vst [vmem:[#allocation7] sm:$0x1] %v54_v14 }
  0x31   :  { %128 = shalt.err (!%p125_p0)
}
  0x32   :  { %65 = dma.vmem_to_hbm [thread:$0]  %s63_s21, 16, %s174_s2, [#allocation4]  }
  0x33   :  { %141 = dma.done.wait [#allocation4], 16  }
  0x34   :  { %142 = vsyncadd [#allocation4], 4294967280 }
  0x35   :  { %69 = vsyncpa [#allocation3], 1 }
  0x36   :  { %70 = vsyncpa [#allocation6], 1 }
  0x37   :  { %71 = vsyncpa [#allocation4], 1 }

</bundles_post_ra>
